<compile_context>
chip_gen: v5e
topology: v5e:2x2
jax: 0.10.0
libtpu: 0.0.40
codegen_flags: <defaults>
</compile_context>

<pallas_src>
import jax
import jax.numpy as jnp
from jax.experimental import pallas as pl
from jax.experimental.pallas import tpu as pltpu


def _round_up(a, m):
    return (a + m - 1) // m * m


def _local_linear_kernel(x_ref, w_ref, b_ref, o_ref):
    # x_ref: (bt, in_features)          compute dtype (bf16 by default)
    # w_ref: (in_features, padded_out)  banded weight, VMEM-resident
    # b_ref: (1, padded_out)            f32 bias (zeros in the lane padding)
    # o_ref: (bt, padded_out)           f32, lane-dense (multiple of 128)
    y = jnp.dot(x_ref[...], w_ref[...], preferred_element_type=jnp.float32)
    o_ref[...] = (y + b_ref[...]).astype(o_ref.dtype)


def _pick_batch_tile(batch, in_features, padded_out, x_bytes, w_bytes,
                     b_tile, vmem_limit_bytes):
    """Largest multiple-of-8 batch tile whose double-buffered footprint fits."""
    rounded_batch = _round_up(batch, 8)
    bt = max(8, min(rounded_batch, _round_up(b_tile, 8)))
    # Keep >= 2 grid steps when the batch allows it, so the "parallel" batch
    # axis can actually engage both v7x TensorCores.
    if rounded_batch >= 16:
        bt = min(bt, max(8, (rounded_batch // 2) // 8 * 8))
    # Constant-index operands (W_band, bias) are still double-buffered by the
    # default pipeline; budget for that explicitly.
    resident = 2 * in_features * padded_out * w_bytes + 2 * padded_out * 4

    def step_bytes(t):
        return 2 * t * in_features * x_bytes + 2 * t * padded_out * 4

    while bt > 8 and resident + step_bytes(bt) > 0.9 * vmem_limit_bytes:
        bt = max(8, (bt // 2) // 8 * 8)
    return bt


def local_linear(x, weights, biases, kernel_size, stride, *,
                 b_tile=512, vmem_limit_bytes=48 * 1024 * 1024,
                 compute_dtype=jnp.bfloat16):
    """x: (batch, in_features); weights: (fold_num, K, L) (= torch W_i.T);
    biases: (fold_num, L).  Returns (batch, fold_num * L) float32."""
    batch, in_features = x.shape
    fold_num, K, L = weights.shape
    assert K == kernel_size
    assert fold_num == (in_features - kernel_size) // stride + 1
    out_width = fold_num * L
    padded_out = _round_up(out_width, 128)          # lane-dense output slab

    # --- Build the banded weight (in_features, padded_out) in the wrapper ---
    # Column f*L + l is fed only by rows [f*stride, f*stride + K); per-fold
    # column ranges are disjoint, so a single scatter-set suffices.
    row_idx = jnp.arange(fold_num)[:, None] * stride + jnp.arange(K)[None, :]
    col_idx = jnp.arange(fold_num)[:, None] * L + jnp.arange(L)[None, :]
    w_band = jnp.zeros((in_features, padded_out), compute_dtype)
    w_band = w_band.at[row_idx[:, :, None], col_idx[:, None, :]].set(
        weights.astype(compute_dtype))

    # Fold-major bias, zero-padded to the lane-dense width, kept in f32.
    b2 = jnp.zeros((1, padded_out), jnp.float32)
    b2 = b2.at[0, :out_width].set(biases.reshape(out_width).astype(jnp.float32))

    x_bytes = jnp.dtype(compute_dtype).itemsize
    w_bytes = jnp.dtype(compute_dtype).itemsize
    bt = _pick_batch_tile(batch, in_features, padded_out, x_bytes, w_bytes,
                          b_tile, vmem_limit_bytes)

    padded_batch = _round_up(batch, bt)
    x_in = x.astype(compute_dtype)
    if padded_batch != batch:
        x_in = jnp.pad(x_in, ((0, padded_batch - batch), (0, 0)))

    out = pl.pallas_call(
        _local_linear_kernel,
        out_shape=jax.ShapeDtypeStruct((padded_batch, padded_out), jnp.float32),
        grid_spec=pltpu.PrefetchScalarGridSpec(
            num_scalar_prefetch=0,
            grid=(padded_batch // bt,),
            in_specs=[
                pl.BlockSpec((bt, in_features), lambda i: (i, 0)),
                # Constant block indices -> banded weight / bias stay resident
                # in VMEM across the whole grid (only re-used, never re-DMA'd).
                pl.BlockSpec((in_features, padded_out), lambda i: (0, 0)),
                pl.BlockSpec((1, padded_out), lambda i: (0, 0)),
            ],
            out_specs=pl.BlockSpec((bt, padded_out), lambda i: (i, 0)),
        ),
        compiler_params=pltpu.CompilerParams(
            dimension_semantics=("parallel",),   # shard batch axis across TCs
            vmem_limit_bytes=vmem_limit_bytes,
        ),
    )(x_in, w_band, b2)

    return out[:batch, :out_width]


def reference_local_linear(x, weights, biases, kernel_size, stride):
    """Pure-JAX reference mirroring the PyTorch forward (f32)."""
    fold_num = weights.shape[0]
    outs = []
    for i in range(fold_num):
        xi = x[:, i * stride: i * stride + kernel_size]    # (B, K)
        outs.append(xi @ weights[i] + biases[i])            # (B, L)
    return jnp.concatenate(outs, axis=1)


if __name__ == "__main__":
    # Small shapes consistent with the module.
    batch = 2
    in_features = 16
    kernel_size = 4
    stride = 2
    local_features = 8
    fold_num = (in_features - kernel_size) // stride + 1    # = 7

    key = jax.random.PRNGKey(0)
    kx, kw, kb = jax.random.split(key, 3)

    x = jax.random.normal(kx, (batch, in_features), dtype=jnp.float32)
    # Stored as (fold_num, K, L) = torch weight (L, K) transposed per fold.
    weights = jax.random.normal(
        kw, (fold_num, kernel_size, local_features), dtype=jnp.float32) * 0.1
    biases = jax.random.normal(
        kb, (fold_num, local_features), dtype=jnp.float32) * 0.1

    y_ref = reference_local_linear(x, weights, biases, kernel_size, stride)

    # Default (bf16 operands on the MXU, f32 accumulate/epilogue).
    y_bf16 = local_linear(x, weights, biases, kernel_size, stride)
    y_bf16 = jax.block_until_ready(y_bf16)
    assert y_bf16.shape == (batch, fold_num * local_features), y_bf16.shape
    assert jnp.allclose(y_bf16, y_ref, atol=2e-2, rtol=2e-2), \
        "bf16 kernel mismatch vs reference"

    # f32 validation path (tight tolerance) through the same kernel.
    y_f32 = local_linear(x, weights, biases, kernel_size, stride,
                         compute_dtype=jnp.float32)
    y_f32 = jax.block_until_ready(y_f32)
    assert jnp.allclose(y_f32, y_ref, atol=1e-5, rtol=1e-5), \
        "f32 kernel mismatch vs reference"

    print("KERNEL_OK")
</pallas_src>

<mosaic_0001>
module attributes {stable_mosaic.version = 11 : i64} {
  func.func @_local_linear_kernel(%arg0: i32, %arg1: memref<8x16xbf16, #tpu.memory_space<vmem>>, %arg2: memref<16x128xbf16, #tpu.memory_space<vmem>>, %arg3: memref<1x128xf32, #tpu.memory_space<vmem>>, %arg4: memref<8x128xf32, #tpu.memory_space<vmem>>) attributes {dimension_semantics = [#tpu.dimension_semantics<parallel>], iteration_bounds = array<i64: 1>, scalar_prefetch = 0 : i64, scratch_operands = 0 : i64, tpu.core_type = #tpu.core_type<tc>, window_params = [{transform_indices = @transform_0, window_bounds = array<i64: 8, 16>}, {pipeline_mode = #tpu.pipeline_mode<synchronous>, transform_indices = @transform_1, window_bounds = array<i64: 16, 128>}, {pipeline_mode = #tpu.pipeline_mode<synchronous>, transform_indices = @transform_2, window_bounds = array<i64: 1, 128>}, {transform_indices = @transform_3, window_bounds = array<i64: 8, 128>}]} {
    %c0 = arith.constant 0 : index
    %c0_0 = arith.constant 0 : index
    %0 = vector.load %arg1[%c0, %c0_0] : memref<8x16xbf16, #tpu.memory_space<vmem>>, vector<8x16xbf16>
    %c0_1 = arith.constant 0 : index
    %c0_2 = arith.constant 0 : index
    %1 = vector.load %arg2[%c0_1, %c0_2] : memref<16x128xbf16, #tpu.memory_space<vmem>>, vector<16x128xbf16>
    %cst = arith.constant dense<0.000000e+00> : vector<8x128xf32>
    %2 = tpu.matmul %0, %1, %cst {dimension_numbers = #tpu.dot_dimension_numbers<[1], [0], [0], [1], [0, 0, 1, 1], [], []>} : vector<8x16xbf16>, vector<16x128xbf16>, vector<8x128xf32> -> vector<8x128xf32>
    %c0_3 = arith.constant 0 : index
    %c0_4 = arith.constant 0 : index
    %3 = vector.load %arg3[%c0_3, %c0_4] : memref<1x128xf32, #tpu.memory_space<vmem>>, vector<1x128xf32>
    %4 = vector.broadcast %3 : vector<1x128xf32> to vector<8x128xf32>
    %5 = arith.addf %2, %4 : vector<8x128xf32>
    %c0_5 = arith.constant 0 : index
    %c0_6 = arith.constant 0 : index
    %6 = vector.load %arg4[%c0_5, %c0_6] : memref<8x128xf32, #tpu.memory_space<vmem>>, vector<8x128xf32>
    tpu.vector_store %arg4[%c0_5, %c0_6], %5 {strides = array<i32>} : memref<8x128xf32, #tpu.memory_space<vmem>>, vector<8x128xf32>,
    return
  }
  func.func @transform_0(%arg0: i32) -> (i32, i32) {
    %c0_i32 = arith.constant 0 : i32
    %c0_i32_0 = arith.constant 0 : i32
    return %arg0, %c0_i32 : i32, i32
  }
  func.func @transform_1(%arg0: i32) -> (i32, i32) {
    %c0_i32 = arith.constant 0 : i32
    %c0_i32_0 = arith.constant 0 : i32
    %c0_i32_1 = arith.constant 0 : i32
    return %c0_i32, %c0_i32_0 : i32, i32
  }
  func.func @transform_2(%arg0: i32) -> (i32, i32) {
    %c0_i32 = arith.constant 0 : i32
    %c0_i32_0 = arith.constant 0 : i32
    %c0_i32_1 = arith.constant 0 : i32
    return %c0_i32, %c0_i32_0 : i32, i32
  }
  func.func @transform_3(%arg0: i32) -> (i32, i32) {
    %c0_i32 = arith.constant 0 : i32
    %c0_i32_0 = arith.constant 0 : i32
    return %arg0, %c0_i32 : i32, i32
  }
}

</mosaic_0001>

<bundles_post_ra>
// kernel: tpu_custom_call.1
= control target key start
LH: loop header
LB: loop body
LE: loop exit
PB: predicated region body
PF: predicated region fallthrough
CT: control target
= control target key end

     0   :  { %8 = vsyncpa [#allocation3], 0  ;;  %s222_s0 = inlined_call_operand.hbm [shape: bf16[8,16], index: 0, kind: input, shape index: {}]   ;;  %s223_s1 = inlined_call_operand.hbm [shape: bf16[16,128], index: 1, kind: input, shape index: {}]   ;;  %s224_s2 = inlined_call_operand.vmem [shape: f32[1,128], index: 2, kind: input, shape index: {}]   ;;  %s225_s3 = inlined_call_operand.hbm [shape: f32[8,128], index: 3, kind: output, shape index: {}]  }
   0x1   :  { %9 = vsyncpa [#allocation6], 0 }
   0x2   :  { %10 = vsyncpa [#allocation4], 0  ;;  %s16_s14 = sshll.u32 %s222_s0, 4  ;;  %s185_s15 = smov [#allocation2]   ;;  %s17_s14 = int_to_ptr.hbm [resolvable:$true] %s16_s14 }
   0x3   :  { %s18_s16 = sshll.u32 %s185_s15, 4  ;;  %s26_s19 = sshll.u32 %s223_s1, 4  ;;  %s19_s16 = int_to_ptr.vmem [resolvable:$true] %s18_s16  ;;  %s27_s19 = int_to_ptr.hbm [resolvable:$true] %s26_s19 }
   0x4   :  { %21 = dma.hbm_to_vmem [thread:$0]  %s17_s14, 64, %s19_s16, [#allocation3]  }
   0x5   :  { %s186_s20 = smov [#allocation5]   ;;  %s187_s22 = smov 64  }
   0x6   :  { %s28_s21 = sshll.u32 %s186_s20, 4  ;;  %s188_s23 = smov 4   ;;  %s29_s21 = int_to_ptr.vmem [resolvable:$true] %s28_s21 }
   0x7   :  { %34 = dma.hbm_to_vmem [thread:$0]  %s27_s19, 128, %s29_s21, [#allocation6], %s187_s22, %s187_s22, %s188_s23  }
   0x8   :  { %179 = dma.done.wait [#allocation3], 64  }
   0x9   :  { %180 = vsyncadd [#allocation3], 4294967232 }
   0xa   :  { %181 = dma.done.wait [#allocation6], 128  }
   0xb   :  { %182 = vsyncadd [#allocation6], 4294967168  ;;  %v100_v0 = vld [vmem:[#allocation5] sm:$0xff]  ;;  %v46_v1 = vld [vmem:[#allocation2] sm:$0xf]  ;;  %vm59_vm0 = vcmask 130048  }
   0xc   :  { %70 = vmatpush.bf16.msra.mxu0 %v100_v0  ;;  %v106_v2 = vld [vmem:[%s224_s2] ss:$0 sm:$0xff]  ;;  %s189_s1 = smov [#allocation7]   ;;  %s84_s28 = sshll.u32 %s225_s3, 4  ;;  %s85_s28 = int_to_ptr.hbm [resolvable:$true] %s84_s28 }
   0xd   :  { %s82_s25 = sshll.u32 %s189_s1, 4  ;;  %s83_s25 = int_to_ptr.vmem [resolvable:$true] %s82_s25 }
   0xf   :  { %99 = vmatmul.msk.bf16.vlgmr.msra.gmra.mxu0 %vm59_vm0, %v46_v1 }
  0x8c   :  { %v72_v3 = vpop.f32.mrf.mxu0 }
  0x8d   :  { %v73_v4 = vadd.f32 %v106_v2, %v72_v3 }
  0x8f   :  { %76 = vst [vmem:[#allocation7] sm:$0xff] %v73_v4 }
  0x90   :  { %87 = dma.vmem_to_hbm [thread:$0]  %s83_s25, 128, %s85_s28, [#allocation4]  }
  0x94   :  { %v74_v5 = vpop.f32.mrf.mxu0 }
  0x95   :  { %183 = dma.done.wait [#allocation4], 128  }
  0x96   :  { %184 = vsyncadd [#allocation4], 4294967168 }
  0x97   :  { %92 = vsyncpa [#allocation3], 1 }
  0x98   :  { %93 = vsyncpa [#allocation6], 1 }
  0x99   :  { %94 = vsyncpa [#allocation4], 1 }

</bundles_post_ra>
